<compile_context>
chip_gen: v6e
topology: v6e:2x2x1
jax: 0.10.0
libtpu: 0.0.40
codegen_flags: <defaults>
</compile_context>

<pallas_src>
import jax
import jax.numpy as jnp
from jax.experimental import pallas as pl
from jax.experimental.pallas import tpu as pltpu


def decoder_step_kernel(emb_ref, h_ref, enc_ref,
                        wih_e_ref, wih_c_ref, whh_ref, bih_ref, bhh_ref,
                        wout_ref, bout_ref,
                        logp_ref, hnew_ref):
    emb = emb_ref[...]                                   # (1, H) embedded token
    h = h_ref[...]                                       # (1, H) previous hidden
    enc = enc_ref[...]                                   # (S, H) encoder outputs

    # ---- attention: dot-product scores + softmax over encoder positions ----
    # TODO(synk): the `attention` submodule is injected and undefined in the
    # spec; a Luong-style dot-product attention is implemented here.
    scores = jnp.sum(enc * h, axis=-1, keepdims=True)    # (S, 1)
    smax = jnp.max(scores, axis=0, keepdims=True)        # (1, 1)
    e = jnp.exp(scores - smax)                           # (S, 1)
    attn = e / jnp.sum(e, axis=0, keepdims=True)         # (S, 1)
    ctx = jnp.sum(attn * enc, axis=0, keepdims=True)     # (1, H) context vector

    # ---- single GRU cell step (gate-major weights: no lane-offset slicing) --
    def gates(g):
        gi = (jnp.dot(emb, wih_e_ref[g], preferred_element_type=jnp.float32)
              + jnp.dot(ctx, wih_c_ref[g], preferred_element_type=jnp.float32)
              + bih_ref[g])
        gh = jnp.dot(h, whh_ref[g], preferred_element_type=jnp.float32) + bhh_ref[g]
        return gi, gh

    i_r, h_r = gates(0)
    i_z, h_z = gates(1)
    i_n, h_n = gates(2)
    r = jax.nn.sigmoid(i_r + h_r)
    z = jax.nn.sigmoid(i_z + h_z)
    n = jnp.tanh(i_n + r * h_n)
    h_new = (1.0 - z) * n + z * h                        # (1, H)

    # ---- output projection + log-softmax (dim=1) ----
    logits = (jnp.dot(h_new, wout_ref[...], preferred_element_type=jnp.float32)
              + bout_ref[...])                           # (1, V)
    lmax = jnp.max(logits, axis=-1, keepdims=True)
    shifted = logits - lmax
    lse = jnp.log(jnp.sum(jnp.exp(shifted), axis=-1, keepdims=True))

    logp_ref[...] = (shifted - lse).astype(logp_ref.dtype)
    hnew_ref[...] = h_new.astype(hnew_ref.dtype)


def decoder_forward(input_token, hidden, encoder_outputs, params):
    """input_token: (1,) int32; hidden: (1,1,H); encoder_outputs: (S,1,H)."""
    emb_tbl = params["embedding"]                        # (V, H)
    w_ih, w_hh = params["w_ih"], params["w_hh"]          # (3H, 2H), (3H, H)
    b_ih, b_hh = params["b_ih"], params["b_hh"]          # (3H,), (3H,)
    w_out, b_out = params["w_out"], params["b_out"]      # (V, H), (V,)
    V, H = emb_tbl.shape
    S = encoder_outputs.shape[0]

    # Embedding gather (single row) — plain-JAX glue.
    emb_row = emb_tbl[input_token]                       # (1, H)

    # Gate-major, pre-transposed weights so each gate is its own lane-dense
    # (H, H) slab and the 2H input projection is split into emb/context halves
    # (no in-kernel concatenation or lane slicing at offsets H / 2H).
    wih_g = w_ih.reshape(3, H, 2 * H)
    wih_e = jnp.transpose(wih_g[:, :, :H], (0, 2, 1))    # (3, H, H)  embedded part
    wih_c = jnp.transpose(wih_g[:, :, H:], (0, 2, 1))    # (3, H, H)  context part
    whh_g = jnp.transpose(w_hh.reshape(3, H, H), (0, 2, 1))  # (3, H, H)
    bih_g = b_ih.reshape(3, 1, H)
    bhh_g = b_hh.reshape(3, 1, H)
    wout_t = w_out.T                                     # (H, V)
    bout2 = b_out.reshape(1, V)

    h2 = hidden.reshape(1, H)                            # layers*batch == 1
    enc2 = encoder_outputs.reshape(S, H)

    logp, h_new = pl.pallas_call(
        decoder_step_kernel,
        out_shape=(jax.ShapeDtypeStruct((1, V), jnp.float32),
                   jax.ShapeDtypeStruct((1, H), jnp.float32)),
        grid_spec=pltpu.PrefetchScalarGridSpec(
            num_scalar_prefetch=0,
            grid=(1,),
            in_specs=[
                pl.BlockSpec((1, H), lambda i: (0, 0)),         # embedded token
                pl.BlockSpec((1, H), lambda i: (0, 0)),         # hidden
                pl.BlockSpec((S, H), lambda i: (0, 0)),         # encoder outputs
                pl.BlockSpec((3, H, H), lambda i: (0, 0, 0)),   # W_ih (emb half)^T
                pl.BlockSpec((3, H, H), lambda i: (0, 0, 0)),   # W_ih (ctx half)^T
                pl.BlockSpec((3, H, H), lambda i: (0, 0, 0)),   # W_hh^T
                pl.BlockSpec((3, 1, H), lambda i: (0, 0, 0)),   # b_ih
                pl.BlockSpec((3, 1, H), lambda i: (0, 0, 0)),   # b_hh
                pl.BlockSpec((H, V), lambda i: (0, 0)),         # W_out^T
                pl.BlockSpec((1, V), lambda i: (0, 0)),         # b_out
            ],
            out_specs=[
                pl.BlockSpec((1, V), lambda i: (0, 0)),         # log-probs
                pl.BlockSpec((1, H), lambda i: (0, 0)),         # new hidden
            ],
        ),
        compiler_params=pltpu.CompilerParams(
            dimension_semantics=("arbitrary",)),
    )(emb_row, h2, enc2, wih_e, wih_c, whh_g, bih_g, bhh_g, wout_t, bout2)

    return logp, h_new.reshape(1, 1, H)


def decoder_reference(tok, hidden, encoder_outputs, params):
    """Pure-JAX reference matching the PyTorch Decoder.forward semantics."""
    H = params["w_hh"].shape[1]
    emb = params["embedding"][tok]                       # (1, H)
    h = hidden[-1]                                       # (1, H)
    enc = encoder_outputs[:, 0, :]                       # (S, H)

    scores = jnp.einsum("sh,h->s", enc, h[0])            # (S,)
    attn = jax.nn.softmax(scores)
    ctx = jnp.einsum("s,sh->h", attn, enc)[None, :]      # (1, H)

    x = jnp.concatenate([emb, ctx], axis=-1)             # (1, 2H)
    gi = x @ params["w_ih"].T + params["b_ih"]
    gh = h @ params["w_hh"].T + params["b_hh"]
    i_r, i_z, i_n = gi[:, :H], gi[:, H:2 * H], gi[:, 2 * H:]
    h_r, h_z, h_n = gh[:, :H], gh[:, H:2 * H], gh[:, 2 * H:]
    r = jax.nn.sigmoid(i_r + h_r)
    z = jax.nn.sigmoid(i_z + h_z)
    n = jnp.tanh(i_n + r * h_n)
    h_new = (1.0 - z) * n + z * h                        # (1, H)

    logits = h_new @ params["w_out"].T + params["b_out"]
    logp = jax.nn.log_softmax(logits, axis=1)
    return logp, h_new[None]


def init_params(key, output_size, hidden_size):
    ks = jax.random.split(key, 7)
    b = 1.0 / jnp.sqrt(hidden_size)
    return {
        "embedding": jax.random.normal(ks[0], (output_size, hidden_size), jnp.float32),
        "w_ih": jax.random.uniform(ks[1], (3 * hidden_size, 2 * hidden_size),
                                   jnp.float32, -b, b),
        "w_hh": jax.random.uniform(ks[2], (3 * hidden_size, hidden_size),
                                   jnp.float32, -b, b),
        "b_ih": jax.random.uniform(ks[3], (3 * hidden_size,), jnp.float32, -b, b),
        "b_hh": jax.random.uniform(ks[4], (3 * hidden_size,), jnp.float32, -b, b),
        "w_out": jax.random.uniform(ks[5], (output_size, hidden_size),
                                    jnp.float32, -b, b),
        "b_out": jax.random.uniform(ks[6], (output_size,), jnp.float32, -b, b),
    }


if __name__ == "__main__":
    OUTPUT_SIZE = 20   # vocab
    HIDDEN = 32
    SEQ = 8

    key = jax.random.PRNGKey(0)
    k_p, k_tok, k_h, k_enc = jax.random.split(key, 4)
    params = init_params(k_p, OUTPUT_SIZE, HIDDEN)

    input_token = jax.random.randint(k_tok, (1,), 0, OUTPUT_SIZE, jnp.int32)
    hidden = jax.random.normal(k_h, (1, 1, HIDDEN), jnp.float32)
    encoder_outputs = jax.random.normal(k_enc, (SEQ, 1, HIDDEN), jnp.float32)

    out, new_hidden = decoder_forward(input_token, hidden, encoder_outputs, params)
    out = jax.block_until_ready(out)
    new_hidden = jax.block_until_ready(new_hidden)

    ref_out, ref_hidden = decoder_reference(input_token, hidden, encoder_outputs, params)
    assert out.shape == (1, OUTPUT_SIZE)
    assert new_hidden.shape == (1, 1, HIDDEN)
    assert jnp.allclose(out, ref_out, atol=1e-5, rtol=1e-5)
    assert jnp.allclose(new_hidden.reshape(1, 1, HIDDEN), ref_hidden, atol=1e-5, rtol=1e-5)

    print("KERNEL_OK")
</pallas_src>

<mosaic_0001>
module attributes {stable_mosaic.version = 11 : i64} {
  func.func @decoder_step_kernel(%arg0: i32, %arg1: memref<1x32xf32, #tpu.memory_space<vmem>>, %arg2: memref<1x32xf32, #tpu.memory_space<vmem>>, %arg3: memref<8x32xf32, #tpu.memory_space<vmem>>, %arg4: memref<3x32x32xf32, #tpu.memory_space<vmem>>, %arg5: memref<3x32x32xf32, #tpu.memory_space<vmem>>, %arg6: memref<3x32x32xf32, #tpu.memory_space<vmem>>, %arg7: memref<3x1x32xf32, #tpu.memory_space<vmem>>, %arg8: memref<3x1x32xf32, #tpu.memory_space<vmem>>, %arg9: memref<32x20xf32, #tpu.memory_space<vmem>>, %arg10: memref<1x20xf32, #tpu.memory_space<vmem>>, %arg11: memref<1x20xf32, #tpu.memory_space<vmem>>, %arg12: memref<1x32xf32, #tpu.memory_space<vmem>>) attributes {dimension_semantics = [#tpu.dimension_semantics<arbitrary>], iteration_bounds = array<i64: 1>, scalar_prefetch = 0 : i64, scratch_operands = 0 : i64, tpu.core_type = #tpu.core_type<tc>, window_params = [{pipeline_mode = #tpu.pipeline_mode<synchronous>, transform_indices = @transform_0, window_bounds = array<i64: 1, 32>}, {pipeline_mode = #tpu.pipeline_mode<synchronous>, transform_indices = @transform_1, window_bounds = array<i64: 1, 32>}, {pipeline_mode = #tpu.pipeline_mode<synchronous>, transform_indices = @transform_2, window_bounds = array<i64: 8, 32>}, {pipeline_mode = #tpu.pipeline_mode<synchronous>, transform_indices = @transform_3, window_bounds = array<i64: 3, 32, 32>}, {pipeline_mode = #tpu.pipeline_mode<synchronous>, transform_indices = @transform_4, window_bounds = array<i64: 3, 32, 32>}, {pipeline_mode = #tpu.pipeline_mode<synchronous>, transform_indices = @transform_5, window_bounds = array<i64: 3, 32, 32>}, {pipeline_mode = #tpu.pipeline_mode<synchronous>, transform_indices = @transform_6, window_bounds = array<i64: 3, 1, 32>}, {pipeline_mode = #tpu.pipeline_mode<synchronous>, transform_indices = @transform_7, window_bounds = array<i64: 3, 1, 32>}, {pipeline_mode = #tpu.pipeline_mode<synchronous>, transform_indices = @transform_8, window_bounds = array<i64: 32, 20>}, {pipeline_mode = #tpu.pipeline_mode<synchronous>, transform_indices = @transform_9, window_bounds = array<i64: 1, 20>}, {pipeline_mode = #tpu.pipeline_mode<synchronous>, transform_indices = @transform_10, window_bounds = array<i64: 1, 20>}, {pipeline_mode = #tpu.pipeline_mode<synchronous>, transform_indices = @transform_11, window_bounds = array<i64: 1, 32>}]} {
    %c0 = arith.constant 0 : index
    %c0_0 = arith.constant 0 : index
    %0 = vector.load %arg1[%c0, %c0_0] : memref<1x32xf32, #tpu.memory_space<vmem>>, vector<1x32xf32>
    %c0_1 = arith.constant 0 : index
    %c0_2 = arith.constant 0 : index
    %1 = vector.load %arg2[%c0_1, %c0_2] : memref<1x32xf32, #tpu.memory_space<vmem>>, vector<1x32xf32>
    %c0_3 = arith.constant 0 : index
    %c0_4 = arith.constant 0 : index
    %2 = vector.load %arg3[%c0_3, %c0_4] : memref<8x32xf32, #tpu.memory_space<vmem>>, vector<8x32xf32>
    %3 = vector.broadcast %1 : vector<1x32xf32> to vector<8x32xf32>
    %4 = arith.mulf %2, %3 : vector<8x32xf32>
    %cst = arith.constant dense<0.000000e+00> : vector<8xf32>
    %5 = vector.multi_reduction <add>, %4, %cst [1] : vector<8x32xf32> to vector<8xf32>
    %6 = vector.shape_cast %5 : vector<8xf32> to vector<8x1xf32>
    %cst_5 = arith.constant dense<0xFF800000> : vector<1xf32>
    %7 = vector.multi_reduction <maximumf>, %6, %cst_5 [0] : vector<8x1xf32> to vector<1xf32>
    %8 = vector.shape_cast %7 : vector<1xf32> to vector<1x1xf32>
    %9 = vector.broadcast %8 : vector<1x1xf32> to vector<8x1xf32>
    %10 = arith.subf %6, %9 : vector<8x1xf32>
    %11 = math.exp %10 : vector<8x1xf32>
    %cst_6 = arith.constant dense<0.000000e+00> : vector<1xf32>
    %12 = vector.multi_reduction <add>, %11, %cst_6 [0] : vector<8x1xf32> to vector<1xf32>
    %13 = vector.shape_cast %12 : vector<1xf32> to vector<1x1xf32>
    %14 = vector.broadcast %13 : vector<1x1xf32> to vector<8x1xf32>
    %15 = arith.divf %11, %14 : vector<8x1xf32>
    %16 = vector.broadcast %15 : vector<8x1xf32> to vector<8x32xf32>
    %17 = arith.mulf %16, %2 : vector<8x32xf32>
    %cst_7 = arith.constant dense<0.000000e+00> : vector<32xf32>
    %18 = vector.multi_reduction <add>, %17, %cst_7 [0] : vector<8x32xf32> to vector<32xf32>
    %19 = vector.shape_cast %18 : vector<32xf32> to vector<1x32xf32>
    %c0_8 = arith.constant 0 : index
    %c0_9 = arith.constant 0 : index
    %c0_10 = arith.constant 0 : index
    %20 = vector.load %arg4[%c0_8, %c0_9, %c0_10] : memref<3x32x32xf32, #tpu.memory_space<vmem>>, vector<1x32x32xf32>
    %21 = vector.shape_cast %20 : vector<1x32x32xf32> to vector<32x32xf32>
    %cst_11 = arith.constant dense<0.000000e+00> : vector<1x32xf32>
    %22 = tpu.matmul %0, %21, %cst_11 {dimension_numbers = #tpu.dot_dimension_numbers<[1], [0], [0], [1], [0, 0, 1, 1], [], []>} : vector<1x32xf32>, vector<32x32xf32>, vector<1x32xf32> -> vector<1x32xf32>
    %c0_12 = arith.constant 0 : index
    %c0_13 = arith.constant 0 : index
    %c0_14 = arith.constant 0 : index
    %23 = vector.load %arg5[%c0_12, %c0_13, %c0_14] : memref<3x32x32xf32, #tpu.memory_space<vmem>>, vector<1x32x32xf32>
    %24 = vector.shape_cast %23 : vector<1x32x32xf32> to vector<32x32xf32>
    %cst_15 = arith.constant dense<0.000000e+00> : vector<1x32xf32>
    %25 = tpu.matmul %19, %24, %cst_15 {dimension_numbers = #tpu.dot_dimension_numbers<[1], [0], [0], [1], [0, 0, 1, 1], [], []>} : vector<1x32xf32>, vector<32x32xf32>, vector<1x32xf32> -> vector<1x32xf32>
    %26 = arith.addf %22, %25 : vector<1x32xf32>
    %c0_16 = arith.constant 0 : index
    %c0_17 = arith.constant 0 : index
    %c0_18 = arith.constant 0 : index
    %27 = vector.load %arg7[%c0_16, %c0_17, %c0_18] : memref<3x1x32xf32, #tpu.memory_space<vmem>>, vector<1x1x32xf32>
    %28 = vector.shape_cast %27 : vector<1x1x32xf32> to vector<1x32xf32>
    %29 = arith.addf %26, %28 : vector<1x32xf32>
    %c0_19 = arith.constant 0 : index
    %c0_20 = arith.constant 0 : index
    %c0_21 = arith.constant 0 : index
    %30 = vector.load %arg6[%c0_19, %c0_20, %c0_21] : memref<3x32x32xf32, #tpu.memory_space<vmem>>, vector<1x32x32xf32>
    %31 = vector.shape_cast %30 : vector<1x32x32xf32> to vector<32x32xf32>
    %cst_22 = arith.constant dense<0.000000e+00> : vector<1x32xf32>
    %32 = tpu.matmul %1, %31, %cst_22 {dimension_numbers = #tpu.dot_dimension_numbers<[1], [0], [0], [1], [0, 0, 1, 1], [], []>} : vector<1x32xf32>, vector<32x32xf32>, vector<1x32xf32> -> vector<1x32xf32>
    %c0_23 = arith.constant 0 : index
    %c0_24 = arith.constant 0 : index
    %c0_25 = arith.constant 0 : index
    %33 = vector.load %arg8[%c0_23, %c0_24, %c0_25] : memref<3x1x32xf32, #tpu.memory_space<vmem>>, vector<1x1x32xf32>
    %34 = vector.shape_cast %33 : vector<1x1x32xf32> to vector<1x32xf32>
    %35 = arith.addf %32, %34 : vector<1x32xf32>
    %c1 = arith.constant 1 : index
    %c0_26 = arith.constant 0 : index
    %c0_27 = arith.constant 0 : index
    %36 = vector.load %arg4[%c1, %c0_26, %c0_27] : memref<3x32x32xf32, #tpu.memory_space<vmem>>, vector<1x32x32xf32>
    %37 = vector.shape_cast %36 : vector<1x32x32xf32> to vector<32x32xf32>
    %cst_28 = arith.constant dense<0.000000e+00> : vector<1x32xf32>
    %38 = tpu.matmul %0, %37, %cst_28 {dimension_numbers = #tpu.dot_dimension_numbers<[1], [0], [0], [1], [0, 0, 1, 1], [], []>} : vector<1x32xf32>, vector<32x32xf32>, vector<1x32xf32> -> vector<1x32xf32>
    %c1_29 = arith.constant 1 : index
    %c0_30 = arith.constant 0 : index
    %c0_31 = arith.constant 0 : index
    %39 = vector.load %arg5[%c1_29, %c0_30, %c0_31] : memref<3x32x32xf32, #tpu.memory_space<vmem>>, vector<1x32x32xf32>
    %40 = vector.shape_cast %39 : vector<1x32x32xf32> to vector<32x32xf32>
    %cst_32 = arith.constant dense<0.000000e+00> : vector<1x32xf32>
    %41 = tpu.matmul %19, %40, %cst_32 {dimension_numbers = #tpu.dot_dimension_numbers<[1], [0], [0], [1], [0, 0, 1, 1], [], []>} : vector<1x32xf32>, vector<32x32xf32>, vector<1x32xf32> -> vector<1x32xf32>
    %42 = arith.addf %38, %41 : vector<1x32xf32>
    %c1_33 = arith.constant 1 : index
    %c0_34 = arith.constant 0 : index
    %c0_35 = arith.constant 0 : index
    %43 = vector.load %arg7[%c1_33, %c0_34, %c0_35] : memref<3x1x32xf32, #tpu.memory_space<vmem>>, vector<1x1x32xf32>
    %44 = vector.shape_cast %43 : vector<1x1x32xf32> to vector<1x32xf32>
    %45 = arith.addf %42, %44 : vector<1x32xf32>
    %c1_36 = arith.constant 1 : index
    %c0_37 = arith.constant 0 : index
    %c0_38 = arith.constant 0 : index
    %46 = vector.load %arg6[%c1_36, %c0_37, %c0_38] : memref<3x32x32xf32, #tpu.memory_space<vmem>>, vector<1x32x32xf32>
    %47 = vector.shape_cast %46 : vector<1x32x32xf32> to vector<32x32xf32>
    %cst_39 = arith.constant dense<0.000000e+00> : vector<1x32xf32>
    %48 = tpu.matmul %1, %47, %cst_39 {dimension_numbers = #tpu.dot_dimension_numbers<[1], [0], [0], [1], [0, 0, 1, 1], [], []>} : vector<1x32xf32>, vector<32x32xf32>, vector<1x32xf32> -> vector<1x32xf32>
    %c1_40 = arith.constant 1 : index
    %c0_41 = arith.constant 0 : index
    %c0_42 = arith.constant 0 : index
    %49 = vector.load %arg8[%c1_40, %c0_41, %c0_42] : memref<3x1x32xf32, #tpu.memory_space<vmem>>, vector<1x1x32xf32>
    %50 = vector.shape_cast %49 : vector<1x1x32xf32> to vector<1x32xf32>
    %51 = arith.addf %48, %50 : vector<1x32xf32>
    %c2 = arith.constant 2 : index
    %c0_43 = arith.constant 0 : index
    %c0_44 = arith.constant 0 : index
    %52 = vector.load %arg4[%c2, %c0_43, %c0_44] : memref<3x32x32xf32, #tpu.memory_space<vmem>>, vector<1x32x32xf32>
    %53 = vector.shape_cast %52 : vector<1x32x32xf32> to vector<32x32xf32>
    %cst_45 = arith.constant dense<0.000000e+00> : vector<1x32xf32>
    %54 = tpu.matmul %0, %53, %cst_45 {dimension_numbers = #tpu.dot_dimension_numbers<[1], [0], [0], [1], [0, 0, 1, 1], [], []>} : vector<1x32xf32>, vector<32x32xf32>, vector<1x32xf32> -> vector<1x32xf32>
    %c2_46 = arith.constant 2 : index
    %c0_47 = arith.constant 0 : index
    %c0_48 = arith.constant 0 : index
    %55 = vector.load %arg5[%c2_46, %c0_47, %c0_48] : memref<3x32x32xf32, #tpu.memory_space<vmem>>, vector<1x32x32xf32>
    %56 = vector.shape_cast %55 : vector<1x32x32xf32> to vector<32x32xf32>
    %cst_49 = arith.constant dense<0.000000e+00> : vector<1x32xf32>
    %57 = tpu.matmul %19, %56, %cst_49 {dimension_numbers = #tpu.dot_dimension_numbers<[1], [0], [0], [1], [0, 0, 1, 1], [], []>} : vector<1x32xf32>, vector<32x32xf32>, vector<1x32xf32> -> vector<1x32xf32>
    %58 = arith.addf %54, %57 : vector<1x32xf32>
    %c2_50 = arith.constant 2 : index
    %c0_51 = arith.constant 0 : index
    %c0_52 = arith.constant 0 : index
    %59 = vector.load %arg7[%c2_50, %c0_51, %c0_52] : memref<3x1x32xf32, #tpu.memory_space<vmem>>, vector<1x1x32xf32>
    %60 = vector.shape_cast %59 : vector<1x1x32xf32> to vector<1x32xf32>
    %61 = arith.addf %58, %60 : vector<1x32xf32>
    %c2_53 = arith.constant 2 : index
    %c0_54 = arith.constant 0 : index
    %c0_55 = arith.constant 0 : index
    %62 = vector.load %arg6[%c2_53, %c0_54, %c0_55] : memref<3x32x32xf32, #tpu.memory_space<vmem>>, vector<1x32x32xf32>
    %63 = vector.shape_cast %62 : vector<1x32x32xf32> to vector<32x32xf32>
    %cst_56 = arith.constant dense<0.000000e+00> : vector<1x32xf32>
    %64 = tpu.matmul %1, %63, %cst_56 {dimension_numbers = #tpu.dot_dimension_numbers<[1], [0], [0], [1], [0, 0, 1, 1], [], []>} : vector<1x32xf32>, vector<32x32xf32>, vector<1x32xf32> -> vector<1x32xf32>
    %c2_57 = arith.constant 2 : index
    %c0_58 = arith.constant 0 : index
    %c0_59 = arith.constant 0 : index
    %65 = vector.load %arg8[%c2_57, %c0_58, %c0_59] : memref<3x1x32xf32, #tpu.memory_space<vmem>>, vector<1x1x32xf32>
    %66 = vector.shape_cast %65 : vector<1x1x32xf32> to vector<1x32xf32>
    %67 = arith.addf %64, %66 : vector<1x32xf32>
    %68 = arith.addf %29, %35 : vector<1x32xf32>
    %69 = arith.negf %68 : vector<1x32xf32>
    %70 = math.exp %69 : vector<1x32xf32>
    %cst_60 = arith.constant 1.000000e+00 : f32
    %71 = vector.broadcast %cst_60 : f32 to vector<1x32xf32>
    %72 = arith.addf %71, %70 : vector<1x32xf32>
    %73 = arith.divf %71, %72 : vector<1x32xf32>
    %74 = arith.addf %45, %51 : vector<1x32xf32>
    %75 = arith.negf %74 : vector<1x32xf32>
    %76 = math.exp %75 : vector<1x32xf32>
    %cst_61 = arith.constant 1.000000e+00 : f32
    %77 = vector.broadcast %cst_61 : f32 to vector<1x32xf32>
    %78 = arith.addf %77, %76 : vector<1x32xf32>
    %79 = arith.divf %77, %78 : vector<1x32xf32>
    %80 = arith.mulf %73, %67 : vector<1x32xf32>
    %81 = arith.addf %61, %80 : vector<1x32xf32>
    %82 = math.tanh %81 : vector<1x32xf32>
    %cst_62 = arith.constant 1.000000e+00 : f32
    %83 = vector.broadcast %cst_62 : f32 to vector<1x32xf32>
    %84 = arith.subf %83, %79 : vector<1x32xf32>
    %85 = arith.mulf %84, %82 : vector<1x32xf32>
    %86 = arith.mulf %79, %1 : vector<1x32xf32>
    %87 = arith.addf %85, %86 : vector<1x32xf32>
    %c0_63 = arith.constant 0 : index
    %c0_64 = arith.constant 0 : index
    %88 = vector.load %arg9[%c0_63, %c0_64] : memref<32x20xf32, #tpu.memory_space<vmem>>, vector<32x20xf32>
    %cst_65 = arith.constant dense<0.000000e+00> : vector<1x20xf32>
    %89 = tpu.matmul %87, %88, %cst_65 {dimension_numbers = #tpu.dot_dimension_numbers<[1], [0], [0], [1], [0, 0, 1, 1], [], []>} : vector<1x32xf32>, vector<32x20xf32>, vector<1x20xf32> -> vector<1x20xf32>
    %c0_66 = arith.constant 0 : index
    %c0_67 = arith.constant 0 : index
    %90 = vector.load %arg10[%c0_66, %c0_67] : memref<1x20xf32, #tpu.memory_space<vmem>>, vector<1x20xf32>
    %91 = arith.addf %89, %90 : vector<1x20xf32>
    %cst_68 = arith.constant dense<0xFF800000> : vector<1xf32>
    %92 = vector.multi_reduction <maximumf>, %91, %cst_68 [1] : vector<1x20xf32> to vector<1xf32>
    %93 = vector.shape_cast %92 : vector<1xf32> to vector<1x1xf32>
    %94 = vector.broadcast %93 : vector<1x1xf32> to vector<1x20xf32>
    %95 = arith.subf %91, %94 : vector<1x20xf32>
    %96 = math.exp %95 : vector<1x20xf32>
    %cst_69 = arith.constant dense<0.000000e+00> : vector<1xf32>
    %97 = vector.multi_reduction <add>, %96, %cst_69 [1] : vector<1x20xf32> to vector<1xf32>
    %98 = vector.shape_cast %97 : vector<1xf32> to vector<1x1xf32>
    %99 = math.log %98 : vector<1x1xf32>
    %100 = vector.broadcast %99 : vector<1x1xf32> to vector<1x20xf32>
    %101 = arith.subf %95, %100 : vector<1x20xf32>
    %c0_70 = arith.constant 0 : index
    %c0_71 = arith.constant 0 : index
    %102 = vector.load %arg11[%c0_70, %c0_71] : memref<1x20xf32, #tpu.memory_space<vmem>>, vector<1x20xf32>
    tpu.vector_store %arg11[%c0_70, %c0_71], %101 {strides = array<i32>} : memref<1x20xf32, #tpu.memory_space<vmem>>, vector<1x20xf32>,
    %c0_72 = arith.constant 0 : index
    %c0_73 = arith.constant 0 : index
    %103 = vector.load %arg12[%c0_72, %c0_73] : memref<1x32xf32, #tpu.memory_space<vmem>>, vector<1x32xf32>
    tpu.vector_store %arg12[%c0_72, %c0_73], %87 {strides = array<i32>} : memref<1x32xf32, #tpu.memory_space<vmem>>, vector<1x32xf32>,
    return
  }
  func.func @transform_0(%arg0: i32) -> (i32, i32) {
    %c0_i32 = arith.constant 0 : i32
    %c0_i32_0 = arith.constant 0 : i32
    %c0_i32_1 = arith.constant 0 : i32
    return %c0_i32, %c0_i32_0 : i32, i32
  }
  func.func @transform_1(%arg0: i32) -> (i32, i32) {
    %c0_i32 = arith.constant 0 : i32
    %c0_i32_0 = arith.constant 0 : i32
    %c0_i32_1 = arith.constant 0 : i32
    return %c0_i32, %c0_i32_0 : i32, i32
  }
  func.func @transform_2(%arg0: i32) -> (i32, i32) {
    %c0_i32 = arith.constant 0 : i32
    %c0_i32_0 = arith.constant 0 : i32
    %c0_i32_1 = arith.constant 0 : i32
    return %c0_i32, %c0_i32_0 : i32, i32
  }
  func.func @transform_3(%arg0: i32) -> (i32, i32, i32) {
    %c0_i32 = arith.constant 0 : i32
    %c0_i32_0 = arith.constant 0 : i32
    %c0_i32_1 = arith.constant 0 : i32
    %c0_i32_2 = arith.constant 0 : i32
    return %c0_i32, %c0_i32_0, %c0_i32_1 : i32, i32, i32
  }
  func.func @transform_4(%arg0: i32) -> (i32, i32, i32) {
    %c0_i32 = arith.constant 0 : i32
    %c0_i32_0 = arith.constant 0 : i32
    %c0_i32_1 = arith.constant 0 : i32
    %c0_i32_2 = arith.constant 0 : i32
    return %c0_i32, %c0_i32_0, %c0_i32_1 : i32, i32, i32
  }
  func.func @transform_5(%arg0: i32) -> (i32, i32, i32) {
    %c0_i32 = arith.constant 0 : i32
    %c0_i32_0 = arith.constant 0 : i32
    %c0_i32_1 = arith.constant 0 : i32
    %c0_i32_2 = arith.constant 0 : i32
    return %c0_i32, %c0_i32_0, %c0_i32_1 : i32, i32, i32
  }
  func.func @transform_6(%arg0: i32) -> (i32, i32, i32) {
    %c0_i32 = arith.constant 0 : i32
    %c0_i32_0 = arith.constant 0 : i32
    %c0_i32_1 = arith.constant 0 : i32
    %c0_i32_2 = arith.constant 0 : i32
    return %c0_i32, %c0_i32_0, %c0_i32_1 : i32, i32, i32
  }
  func.func @transform_7(%arg0: i32) -> (i32, i32, i32) {
    %c0_i32 = arith.constant 0 : i32
    %c0_i32_0 = arith.constant 0 : i32
    %c0_i32_1 = arith.constant 0 : i32
    %c0_i32_2 = arith.constant 0 : i32
    return %c0_i32, %c0_i32_0, %c0_i32_1 : i32, i32, i32
  }
  func.func @transform_8(%arg0: i32) -> (i32, i32) {
    %c0_i32 = arith.constant 0 : i32
    %c0_i32_0 = arith.constant 0 : i32
    %c0_i32_1 = arith.constant 0 : i32
    return %c0_i32, %c0_i32_0 : i32, i32
  }
  func.func @transform_9(%arg0: i32) -> (i32, i32) {
    %c0_i32 = arith.constant 0 : i32
    %c0_i32_0 = arith.constant 0 : i32
    %c0_i32_1 = arith.constant 0 : i32
    return %c0_i32, %c0_i32_0 : i32, i32
  }
  func.func @transform_10(%arg0: i32) -> (i32, i32) {
    %c0_i32 = arith.constant 0 : i32
    %c0_i32_0 = arith.constant 0 : i32
    %c0_i32_1 = arith.constant 0 : i32
    return %c0_i32, %c0_i32_0 : i32, i32
  }
  func.func @transform_11(%arg0: i32) -> (i32, i32) {
    %c0_i32 = arith.constant 0 : i32
    %c0_i32_0 = arith.constant 0 : i32
    %c0_i32_1 = arith.constant 0 : i32
    return %c0_i32, %c0_i32_0 : i32, i32
  }
}

</mosaic_0001>

<bundles_post_ra>
// kernel: tpu_custom_call.1
= control target key start
LH: loop header
LB: loop body
LE: loop exit
PB: predicated region body
PF: predicated region fallthrough
CT: control target
= control target key end

     0   :  { %17 = vsyncpa [#allocation3], 0  ;;  %s1490_s0 = inlined_call_operand.vmem [shape: f32[1,32], index: 0, kind: input, shape index: {}]   ;;  %s1491_s1 = inlined_call_operand.vmem [shape: f32[1,32], index: 1, kind: input, shape index: {}]   ;;  %s1492_s2 = inlined_call_operand.vmem [shape: f32[8,32], index: 2, kind: input, shape index: {}]   ;;  %s1493_s3 = inlined_call_operand.hbm [shape: f32[3,32,32], index: 3, kind: input, shape index: {}]   ;;  %s1494_s4 = inlined_call_operand.hbm [shape: f32[3,32,32], index: 4, kind: input, shape index: {}]   ;;  %s1495_s5 = inlined_call_operand.hbm [shape: f32[3,32,32], index: 5, kind: input, shape index: {}]   ;;  %s1496_s6 = inlined_call_operand.vmem [shape: f32[3,1,32], index: 6, kind: input, shape index: {}]   ;;  %s1497_s7 = inlined_call_operand.vmem [shape: f32[3,1,32], index: 7, kind: input, shape index: {}]   ;;  %s1498_s8 = inlined_call_operand.vmem [shape: f32[32,20], index: 8, kind: input, shape index: {}]   ;;  %s1499_s9 = inlined_call_operand.vmem [shape: f32[1,20], index: 9, kind: input, shape index: {}]   ;;  %s1500_s10 = inlined_call_operand.hbm [shape: f32[1,20], index: 10, kind: output, shape index: {0}]   ;;  %s1501_s11 = inlined_call_operand.hbm [shape: f32[1,32], index: 11, kind: output, shape index: {1}]  }
   0x1   :  { %18 = vsyncpa [#allocation6], 0 }
   0x2   :  { %19 = vsyncpa [#allocation4], 0 }
   0x3   :  { %20 = vsyncpa [#allocation10], 0  ;;  %s1268_s17 = smov [#allocation5]   ;;  %s1269_s19 = smov [#allocation2]  }
   0x4   :  { %s44_s18 = sshll.u32 %s1268_s17, 4  ;;  %s32_s20 = sshll.u32 %s1269_s19, 4  ;;  %s45_s18 = int_to_ptr.vmem [resolvable:$true] %s44_s18  ;;  %s33_s20 = int_to_ptr.vmem [resolvable:$true] %s32_s20 }
   0x5   :  { %s1168_s21 = scalar_lea.vmem %s45_s18, 1536  ;;  %p1173_p1 = scmp.lt.s32.totalorder %s45_s18, %s45_s18 }
   0x6   :  { %p1169_p0 = scmp.ne.s32.totalorder %s45_s18, %s1168_s21  ;;  %p1174_p2 = scmp.lt.s32.totalorder %s1168_s21, %s1168_s21 }
   0x8   :  { %p1175_p3 = por %p1174_p2, %p1173_p1 }
   0xa   :  { %p1176_p4 = pnand %p1175_p3, %p1169_p0 }
   0xc   :  { %1179 = shalt.err (!%p1176_p4)
}
   0xd   :  { %s1270_s22 = smov 128   ;;  %s1271_s23 = smov 8  }
   0xe   :  { %50 = dma.hbm_to_vmem [thread:$0]  %s1494_s4, 1536, %s45_s18, [#allocation6], %s1270_s22, %s1270_s22, %s1271_s23  }
   0xf   :  { %s1188_s26 = scalar_lea.vmem %s33_s20, 1536  ;;  %p1193_p6 = scmp.lt.s32.totalorder %s33_s20, %s33_s20 }
  0x10   :  { %p1189_p5 = scmp.ne.s32.totalorder %s33_s20, %s1188_s26  ;;  %p1194_p7 = scmp.lt.s32.totalorder %s1188_s26, %s1188_s26 }
  0x12   :  { %p1195_p8 = por %p1194_p7, %p1193_p6 }
  0x14   :  { %p1196_p9 = pnand %p1195_p8, %p1189_p5 }
  0x16   :  { %1199 = shalt.err (!%p1196_p9)
}
  0x17   :  { %38 = dma.hbm_to_vmem [thread:$0]  %s1493_s3, 1536, %s33_s20, [#allocation3], %s1270_s22, %s1270_s22, %s1271_s23  }
  0x18   :  { %s1272_s29 = smov [#allocation7]  }
  0x19   :  { %s56_s30 = sshll.u32 %s1272_s29, 4  ;;  %s57_s30 = int_to_ptr.vmem [resolvable:$true] %s56_s30 }
  0x1a   :  { %s1208_s12 = scalar_lea.vmem %s57_s30, 1536  ;;  %p1213_p11 = scmp.lt.s32.totalorder %s57_s30, %s57_s30 }
  0x1b   :  { %p1209_p10 = scmp.ne.s32.totalorder %s57_s30, %s1208_s12  ;;  %p1214_p12 = scmp.lt.s32.totalorder %s1208_s12, %s1208_s12 }
  0x1d   :  { %p1215_p13 = por %p1214_p12, %p1213_p11 }
  0x1f   :  { %p1216_p0 = pnand %p1215_p13, %p1209_p10 }
  0x21   :  { %1219 = shalt.err (!%p1216_p0)
}
  0x22   :  { %62 = dma.hbm_to_vmem [thread:$0]  %s1495_s5, 1536, %s57_s30, [#allocation6], %s1270_s22, %s1270_s22, %s1271_s23  }
  0x23   :  { %1260 = dma.done.wait [#allocation3], 1536  }
  0x24   :  { %1261 = vsyncadd [#allocation3], 4294965760 }
  0x25   :  { %1262 = dma.done.wait [#allocation6], 3072  }
  0x26   :  { %1263 = vsyncadd [#allocation6], 4294964224  ;;  %v84_v0 = vlaneseq  ;;  %v1349_v3 = vld [vmem:[%s1491_s1] sm:$0x1]  ;;  %vm90_vm0 = vcmask 261120   ;;  %v122_v8 = vld [vmem:[#allocation2 + $0x18] sm:$0xff] }
  0x27   :  { %v1354_v4 = vld [vmem:[%s1492_s2] sm:$0xff]  ;;  %v1273_v9 = vmov 0.0   ;;  %v121_v10 = vld [vmem:[#allocation2 + $0x10] sm:$0xff]  ;;  %v126_v11 = vld [vmem:[#allocation5 + $0x18] sm:$0xff]  ;;  %vm1274_vm1 = vmmov 0   ;;  %vm925_vm2 = vcmask 253952  }
  0x28   :  { %v85_v1 = vshrl.u32 %v84_v0, 7  ;;  %1034 = vmatprep.subr.mxu1 %v1273_v9  ;;  %1023 = vmatprep.subr.mxu0 %v1273_v9  ;;  %v125_v12 = vld [vmem:[#allocation5 + $0x10] sm:$0xff]  ;;  %v120_v13 = vld [vmem:[#allocation2 + $0x8] sm:$0xff]  ;;  %v119_v15 = vld [vmem:[#allocation2] sm:$0xff]  ;;  %vm911_vm3 = vcmask 155648  }
  0x29   :  { %1035 = vmatpush3.msra.mxu1 %v122_v8  ;;  %1024 = vmatpush3.msra.mxu0 %v126_v11  ;;  %v124_v14 = vld [vmem:[#allocation5 + $0x8] sm:$0xff]  ;;  %v1369_v16 = vld [vmem:[%s1490_s0] sm:$0x1]  ;;  %v361_v17 = vld [vmem:[#allocation5 + $0x38] sm:$0xff] }
  0x2a   :  { %v86_v2 = vsub.s32 0, %v85_v1  ;;  %1036 = vmatprep.subr.mxu1 %v1273_v9  ;;  %1042 = vmatprep.mubr.msk.f32.mxu1 %vm1274_vm1, %v1273_v9  ;;  %v123_v18 = vld [vmem:[#allocation5] sm:$0xff]  ;;  %v360_v19 = vld [vmem:[#allocation5 + $0x30] sm:$0xff]  ;;  %v359_v20 = vld [vmem:[#allocation5 + $0x28] sm:$0xff] }
  0x2b   :  { %1037 = vmatpush3.msra.mxu1 %v121_v10  ;;  %1025 = vmatprep.subr.mxu0 %v1273_v9  ;;  %v358_v21 = vld [vmem:[#allocation5 + $0x20] sm:$0xff]  ;;  %v278_v48 = vld [vmem:[#allocation7 + $0x18] sm:$0xff]  ;;  %v277_v50 = vld [vmem:[#allocation7 + $0x10] sm:$0xff] }
  0x2c   :  { %v87_v5 = vrot.slane %v1349_v3, %v86_v2  ;;  %1038 = vmatprep.subr.mxu1 %v1273_v9  ;;  %1026 = vmatpush3.msra.mxu0 %v125_v12  ;;  %v509_v49 = vld [vmem:[#allocation7 + $0x38] sm:$0xff]  ;;  %v508_v51 = vld [vmem:[#allocation7 + $0x30] sm:$0xff]  ;;  %v276_v52 = vld [vmem:[#allocation7 + $0x8] sm:$0xff] }
  0x2d   :  { %1039 = vmatpush3.msra.mxu1 %v120_v13  ;;  %1027 = vmatprep.subr.mxu0 %v1273_v9  ;;  %v507_v53 = vld [vmem:[#allocation7 + $0x28] sm:$0xff]  ;;  %v275_v54 = vld [vmem:[#allocation7] sm:$0xff]  ;;  %v356_v55 = vld [vmem:[#allocation2 + $0x38] sm:$0xff] }
  0x2e   :  { %v89_v6 = vmul.f32 %v87_v5, %v1354_v4  ;;  %1040 = vmatprep.subr.mxu1 %v1273_v9  ;;  %1028 = vmatpush3.msra.mxu0 %v124_v14  ;;  %v506_v56 = vld [vmem:[#allocation7 + $0x20] sm:$0xff]  ;;  %v355_v57 = vld [vmem:[#allocation2 + $0x30] sm:$0xff]  ;;  %v354_v58 = vld [vmem:[#allocation2 + $0x28] sm:$0xff] }
  0x2f   :  { %1041 = vmatpush3.msra.mxu1 %v119_v15  ;;  %1029 = vmatprep.subr.mxu0 %v1273_v9  ;;  %v586_v59 = vld [vmem:[#allocation2 + $0x58] sm:$0xff]  ;;  %v353_v60 = vld [vmem:[#allocation2 + $0x20] sm:$0xff]  ;;  %v585_v62 = vld [vmem:[#allocation2 + $0x50] sm:$0xff] }
  0x30   :  { %v91_v7 = vsel %vm90_vm0, %v89_v6, 0.0  ;;  %1056 = vmatprep.subr.mxu1 %v1273_v9  ;;  %1043 = vmatmul.mubr.msk.f32.vlgmr.msra.gmra.mxu1 %vm90_vm0, %v1369_v16  ;;  %v591_v61 = vld [vmem:[#allocation5 + $0x58] sm:$0xff]  ;;  %v590_v63 = vld [vmem:[#allocation5 + $0x50] sm:$0xff]  ;;  %v584_v0 = vld [vmem:[#allocation2 + $0x48] sm:$0xff] }
  0x31   :  { %92 = vadd.xlane.f32.xlu0 %v91_v7  ;;  %1057 = vmatpush3.msra.mxu1 %v361_v17  ;;  %v589_v1 = vld [vmem:[#allocation5 + $0x48] sm:$0xff]  ;;  %v583_v2 = vld [vmem:[#allocation2 + $0x40] sm:$0xff]  ;;  %v739_v5 = vld [vmem:[#allocation7 + $0x58] sm:$0xff] }
  0x32   :  { %1030 = vmatpush3.msra.mxu0 %v123_v18  ;;  %1058 = vmatprep.subr.mxu1 %v1273_v9  ;;  %v738_v6 = vld [vmem:[#allocation7 + $0x50] sm:$0xff]  ;;  %v737_v7 = vld [vmem:[#allocation7 + $0x48] sm:$0xff]  ;;  %v736_v8 = vld [vmem:[#allocation7 + $0x40] sm:$0xff] }
  0x33   :  { %1031 = vmatprep.mubr.msk.f32.mxu0 %vm1274_vm1, %v1273_v9  ;;  %1059 = vmatpush3.msra.mxu1 %v360_v19  ;;  %v836_v12 = vld [vmem:[%s1498_s8 + $0x18] sm:$0xff]  ;;  %v835_v13 = vld [vmem:[%s1498_s8 + $0x10] sm:$0xff]  ;;  %v834_v14 = vld [vmem:[%s1498_s8 + $0x8] sm:$0xff] }
  0x34   :  { %1045 = vmatprep.subr.mxu0 %v1273_v9  ;;  %1060 = vmatprep.subr.mxu1 %v1273_v9  ;;  %v833_v15 = vld [vmem:[%s1498_s8] sm:$0xff] }
  0x35   :  { %1064 = vmatprep.mubr.msk.f32.mxu1 %vm1274_vm1, %v1273_v9  ;;  %1061 = vmatpush3.msra.mxu1 %v359_v20 }
  0x36   :  { %1062 = vmatprep.subr.mxu1 %v1273_v9 }
  0x37   :  { %1063 = vmatpush3.msra.mxu1 %v358_v21  ;;  %v273_v21 = vld [vmem:[%s1496_s6] sm:$0x1] }
  0x38   :  { %1078 = vmatprep.subr.mxu1 %v1273_v9 }
  0xba   :  { %v93_v22 = vpop.xlane.xlu0 %92 }
  0xbb   :  { %v94_v23 = vrot.slane %v93_v22, 4 }
  0xbd   :  { %v95_v24 = vmax.f32 %v93_v22, %v94_v23 }
  0xbf   :  { %v96_v25 = vrot.slane %v95_v24, 2 }
  0xc1   :  { %v97_v26 = vmax.f32 %v95_v24, %v96_v25 }
  0xc3   :  { %v98_v27 = vrot.slane %v97_v26, 1 }
  0xc5   :  { %v99_v28 = vmax.f32 %v97_v26, %v98_v27 }
  0xc7   :  { %v100_v29 = vsub.f32 %v93_v22, %v99_v28  ;;  %v279_v22 = vld [vmem:[%s1497_s7] sm:$0x1] }
  0xc9   :  { %v101_v30 = vmul.f32 1.442695, %v100_v29  ;;  %v963_v29 = vld [vmem:[%s1497_s7 + $0x1] sm:$0x1] }
  0xcb   :  { %1142 = vpow2.f32 %v101_v30 }
  0xd8   :  { %v1143_v31 = vpop.eup %1142 }
  0xd9   :  { %v103_v32 = vrot.slane %v1143_v31, 4 }
  0xdb   :  { %v104_v33 = vadd.f32 %v1143_v31, %v103_v32  ;;  %v962_v32 = vld [vmem:[%s1496_s6 + $0x1] sm:$0x1] }
  0xdd   :  { %v105_v34 = vrot.slane %v104_v33, 2 }
  0xdf   :  { %v106_v35 = vadd.f32 %v105_v34, %v104_v33 }
  0xe1   :  { %v107_v36 = vrot.slane %v106_v35, 1 }
  0xe3   :  { %v108_v37 = vadd.f32 %v107_v36, %v106_v35 }
  0xe5   :  { %1144 = vrcp.f32 %v108_v37 }
  0xf0   :  { %v269_v10 = vpop.f32.mrf.mxu1 }
  0xf2   :  { %v1145_v38 = vpop.eup %1144  ;;  %v1044_v11 = vpop.f32.mrf.mxu1 }
  0xf3   :  { %v110_v39 = vmul.f32 %v1145_v38, %v1143_v31 }
  0xf5   :  { %v111_v40 = vmul.f32 %v110_v39, %v1354_v4  ;;  %v588_v4 = vld [vmem:[#allocation5 + $0x40] sm:$0xff] }
  0xf7   :  { %v112_v41 = vsel %vm90_vm0, %v111_v40, 0.0 }
  0xf8   :  { %v113_v42 = vrot.slane %v112_v41, 4 }
  0xfa   :  { %v114_v43 = vadd.f32 %v113_v42, %v112_v41 }
  0xfc   :  { %v115_v44 = vrot.slane %v114_v43, 2 }
  0xfe   :  { %v116_v45 = vadd.f32 %v115_v44, %v114_v43 }
 0x100   :  { %v117_v46 = vrot.slane %v116_v45, 1 }
 0x102   :  { %v1388_v47 = vadd.f32 %v117_v46, %v116_v45 }
 0x104   :  { %1032 = vmatmul.mubr.msk.f32.vlgmr.msra.gmra.mxu0 %vm90_vm0, %v1388_v47  ;;  %1065 = vmatmul.mubr.msk.f32.vlgmr.msra.gmra.mxu1 %vm90_vm0, %v1388_v47 }
 0x105   :  { %1046 = vmatpush3.msra.mxu0 %v278_v48  ;;  %1053 = vmatprep.mubr.msk.f32.mxu0 %vm1274_vm1, %v1273_v9  ;;  %v968_v48 = vld [vmem:[%s1497_s7 + $0x2] sm:$0x1] }
 0x106   :  { %1047 = vmatprep.subr.mxu0 %v1273_v9  ;;  %1079 = vmatpush3.msra.mxu1 %v509_v49 }
 0x107   :  { %1048 = vmatpush3.msra.mxu0 %v277_v50  ;;  %1080 = vmatprep.subr.mxu1 %v1273_v9 }
 0x108   :  { %1049 = vmatprep.subr.mxu0 %v1273_v9  ;;  %1081 = vmatpush3.msra.mxu1 %v508_v51 }
 0x109   :  { %1050 = vmatpush3.msra.mxu0 %v276_v52  ;;  %1082 = vmatprep.subr.mxu1 %v1273_v9  ;;  %v967_v52 = vld [vmem:[%s1496_s6 + $0x2] sm:$0x1]  ;;  %s1275_s6 = smov [#allocation9]  }
 0x10a   :  { %1051 = vmatprep.subr.mxu0 %v1273_v9  ;;  %1083 = vmatpush3.msra.mxu1 %v507_v53  ;;  %s943_s14 = sshll.u32 %s1275_s6, 4  ;;  %s944_s14 = int_to_ptr.vmem [resolvable:$true] %s943_s14 }
 0x10b   :  { %1052 = vmatpush3.msra.mxu0 %v275_v54  ;;  %1084 = vmatprep.subr.mxu1 %v1273_v9  ;;  %s1220_s15 = scalar_lea.vmem %s944_s14, 16  ;;  %p1225_p2 = scmp.lt.s32.totalorder %s944_s14, %s944_s14 }
 0x10c   :  { %1054 = vmatmul.mubr.msk.f32.vlgmr.msra.gmra.mxu0 %vm90_vm0, %v1349_v3  ;;  %1067 = vmatprep.subr.mxu0 %v1273_v9  ;;  %p1221_p1 = scmp.ne.s32.totalorder %s944_s14, %s1220_s15 }
 0x10d   :  { %1068 = vmatpush3.msra.mxu0 %v356_v55  ;;  %1075 = vmatprep.mubr.msk.f32.mxu0 %vm1274_vm1, %v1273_v9 }
 0x10e   :  { %1069 = vmatprep.subr.mxu0 %v1273_v9  ;;  %1085 = vmatpush3.msra.mxu1 %v506_v56 }
 0x10f   :  { %1070 = vmatpush3.msra.mxu0 %v355_v57  ;;  %1086 = vmatprep.mubr.msk.f32.mxu1 %vm1274_vm1, %v1273_v9 }
 0x110   :  { %1071 = vmatprep.subr.mxu0 %v1273_v9  ;;  %1100 = vmatprep.subr.mxu1 %v1273_v9 }
 0x111   :  { %1072 = vmatpush3.msra.mxu0 %v354_v58  ;;  %1087 = vmatmul.mubr.msk.f32.vlgmr.msra.gmra.mxu1 %vm90_vm0, %v1349_v3 }
 0x112   :  { %1073 = vmatprep.subr.mxu0 %v1273_v9  ;;  %1101 = vmatpush3.msra.mxu1 %v586_v59 }
 0x113   :  { %1074 = vmatpush3.msra.mxu0 %v353_v60  ;;  %1102 = vmatprep.subr.mxu1 %v1273_v9 }
 0x114   :  { %1076 = vmatmul.mubr.msk.f32.vlgmr.msra.gmra.mxu0 %vm90_vm0, %v1369_v16  ;;  %1089 = vmatprep.subr.mxu0 %v1273_v9 }
 0x115   :  { %1090 = vmatpush3.msra.mxu0 %v591_v61  ;;  %1103 = vmatpush3.msra.mxu1 %v585_v62 }
 0x116   :  { %1091 = vmatprep.subr.mxu0 %v1273_v9  ;;  %1104 = vmatprep.subr.mxu1 %v1273_v9 }
 0x117   :  { %1092 = vmatpush3.msra.mxu0 %v590_v63  ;;  %1105 = vmatpush3.msra.mxu1 %v584_v0  ;;  %v837_v63 = vld [vmem:[%s1499_s9] sm:$0x1]  ;;  %s1224_s9 = scalar_lea.vmem %s944_s14, 32 }
 0x118   :  { %1093 = vmatprep.subr.mxu0 %v1273_v9  ;;  %1106 = vmatprep.subr.mxu1 %v1273_v9  ;;  %p1226_p3 = scmp.lt.s32.totalorder %s1224_s9, %s1220_s15 }
 0x119   :  { %1094 = vmatpush3.msra.mxu0 %v589_v1  ;;  %1097 = vmatprep.mubr.msk.f32.mxu0 %vm1274_vm1, %v1273_v9 }
 0x11a   :  { %1095 = vmatprep.subr.mxu0 %v1273_v9  ;;  %1107 = vmatpush3.msra.mxu1 %v583_v2  ;;  %p1227_p4 = por %p1226_p3, %p1225_p2 }
 0x11b   :  { %1096 = vmatpush3.msra.mxu0 %v588_v4  ;;  %1108 = vmatprep.mubr.msk.f32.mxu1 %vm1274_vm1, %v1273_v9 }
 0x11c   :  { %1098 = vmatmul.mubr.msk.f32.vlgmr.msra.gmra.mxu0 %vm90_vm0, %v1388_v47  ;;  %1109 = vmatmul.mubr.msk.f32.vlgmr.msra.gmra.mxu1 %vm90_vm0, %v1369_v16  ;;  %p1228_p5 = pnand %p1227_p4, %p1221_p1 }
 0x11d   :  { %1111 = vmatprep.subr.mxu0 %v1273_v9  ;;  %1119 = vmatprep.mubr.msk.f32.mxu0 %vm1274_vm1, %v1273_v9 }
 0x11e   :  { %1112 = vmatpush3.msra.mxu0 %v739_v5  ;;  %1122 = vmatprep.subr.mxu1 %v1273_v9 }
 0x11f   :  { %1113 = vmatprep.subr.mxu0 %v1273_v9  ;;  %1130 = vmatprep.mubr.msk.f32.mxu1 %vm1274_vm1, %v1273_v9 }
 0x120   :  { %1114 = vmatpush3.msra.mxu0 %v738_v6  ;;  %1123 = vmatpush3.msra.mxu1 %v836_v12 }
 0x121   :  { %1115 = vmatprep.subr.mxu0 %v1273_v9  ;;  %1124 = vmatprep.subr.mxu1 %v1273_v9 }
 0x122   :  { %1116 = vmatpush3.msra.mxu0 %v737_v7  ;;  %1125 = vmatpush3.msra.mxu1 %v835_v13 }
 0x123   :  { %1117 = vmatprep.subr.mxu0 %v1273_v9  ;;  %1126 = vmatprep.subr.mxu1 %v1273_v9 }
 0x124   :  { %1118 = vmatpush3.msra.mxu0 %v736_v8  ;;  %1127 = vmatpush3.msra.mxu1 %v834_v14 }
 0x125   :  { %1120 = vmatmul.mubr.msk.f32.vlgmr.msra.gmra.mxu0 %vm90_vm0, %v1349_v3  ;;  %1128 = vmatprep.subr.mxu1 %v1273_v9 }
 0x126   :  { %1129 = vmatpush3.msra.mxu1 %v833_v15 }
 0x1c4   :  { %v196_v16 = vpop.f32.mrf.mxu0  ;;  %v428_v17 = vpop.f32.mrf.mxu1 }
 0x1c5   :  { %v270_v20 = vadd.f32 %v269_v10, %v196_v16 }
 0x1c6   :  { %v1033_v18 = vpop.f32.mrf.mxu0  ;;  %v1066_v19 = vpop.f32.mrf.mxu1 }
 0x1c7   :  { %v274_v24 = vadd.f32 %v273_v21, %v270_v20 }
 0x1cc   :  { %v348_v23 = vpop.f32.mrf.mxu0 }
 0x1cd   :  { %v349_v25 = vadd.f32 %v348_v23, %v279_v22 }
 0x1ce   :  { %v1055_v26 = vpop.f32.mrf.mxu0 }
 0x1cf   :  { %v812_v27 = vadd.f32 %v349_v25, %v274_v24 }
 0x1d1   :  { %v970_v9 = vmul.f32 -1.442695, %v812_v27  ;;  %v578_v28 = vpop.f32.mrf.mxu1 }
 0x1d2   :  { %v579_v34 = vadd.f32 %v963_v29, %v578_v28 }
 0x1d3   :  { %1146 = vpow2.f32 %v970_v9  ;;  %v1088_v30 = vpop.f32.mrf.mxu1 }
 0x1d4   :  { %v498_v31 = vpop.f32.mrf.mxu0 }
 0x1d5   :  { %v499_v33 = vadd.f32 %v498_v31, %v428_v17 }
 0x1d6   :  { %v1077_v35 = vpop.f32.mrf.mxu0 }
 0x1d7   :  { %v504_v36 = vadd.f32 %v962_v32, %v499_v33 }
 0x1d9   :  { %v819_v37 = vadd.f32 %v579_v34, %v504_v36 }
 0x1db   :  { %v971_v38 = vmul.f32 -1.442695, %v819_v37 }
 0x1dc   :  { %v658_v39 = vpop.f32.mrf.mxu0  ;;  %v728_v40 = vpop.f32.mrf.mxu1 }
 0x1dd   :  { %1148 = vpow2.f32 %v971_v38  ;;  %v729_v50 = vadd.f32 %v728_v40, %v658_v39 }
 0x1de   :  { %v1099_v41 = vpop.f32.mrf.mxu0  ;;  %v1110_v42 = vpop.f32.mrf.mxu1 }
 0x1df   :  { %v734_v54 = vadd.f32 %v967_v52, %v729_v50 }
 0x1e0   :  { %v1147_v43 = vpop.eup %1146 }
 0x1e1   :  { %v816_v44 = vadd.f32 1.0, %v1147_v43 }
 0x1e3   :  { %1150 = vrcp.f32 %v816_v44 }
 0x1e5   :  { %v808_v45 = vpop.f32.mrf.mxu0 }
 0x1e6   :  { %v809_v51 = vadd.f32 %v968_v48, %v808_v45 }
 0x1e7   :  { %v1121_v46 = vpop.f32.mrf.mxu0 }
 0x1ea   :  { %v1149_v47 = vpop.eup %1148 }
 0x1eb   :  { %v823_v49 = vadd.f32 1.0, %v1149_v47 }
 0x1ed   :  { %1152 = vrcp.f32 %v823_v49 }
 0x1f0   :  { %v1151_v53 = vpop.eup %1150 }
 0x1f1   :  { %v826_v55 = vmul.f32 %v1151_v53, %v809_v51 }
 0x1f3   :  { %v827_v56 = vadd.f32 %v826_v55, %v734_v54 }
 0x1f5   :  { %1154 = vtanh.f32 %v827_v56 }
 0x1fa   :  { %v1153_v57 = vpop.eup %1152 }
 0x1fb   :  { %v829_v58 = vsub.f32 1.0, %v1153_v57  ;;  %v831_v61 = vmul.f32 %v1153_v57, %v1349_v3 }
 0x202   :  { %v1155_v59 = vpop.eup %1154 }
 0x203   :  { %v830_v60 = vmul.f32 %v1155_v59, %v829_v58 }
 0x205   :  { %v832_v62 = vadd.f32 %v831_v61, %v830_v60 }
 0x207   :  { %1131 = vmatmul.mubr.msk.f32.vlgmr.msra.gmra.mxu1 %vm90_vm0, %v832_v62  ;;  %926 = vst.msk [vmem:[#allocation9] sm:$0x1] %vm925_vm2, %v832_v62 }
 0x2c7   :  { %v907_v0 = vpop.f32.mrf.mxu1 }
 0x2c8   :  { %v908_v1 = vadd.f32 %v907_v0, %v837_v63 }
 0x2c9   :  { %v1132_v2 = vpop.f32.mrf.mxu1 }
 0x2ca   :  { %v912_v4 = vsel %vm911_vm3, %v908_v1, -inf }
 0x2cb   :  { %913 = vmax.xlane.f32.xlu0 %v912_v4 }
 0x354   :  { %v914_v5 = vpop.xlane.xlu0 %913 }
 0x355   :  { %v915_v6 = vsub.f32 %v908_v1, %v914_v5 }
 0x357   :  { %v916_v7 = vmul.f32 1.442695, %v915_v6 }
 0x359   :  { %1156 = vpow2.f32 %v916_v7 }
 0x366   :  { %v1157_v3 = vpop.eup %1156 }
 0x367   :  { %v918_v8 = vsel %vm911_vm3, %v1157_v3, 0.0 }
 0x368   :  { %919 = vadd.xlane.f32.xlu1 %v918_v8 }
 0x369   :  { %1231 = shalt.err (!%p1228_p5)
}
 0x36a   :  { %946 = dma.vmem_to_hbm [thread:$0]  %s944_s14, 16, %s1501_s11, [#allocation10]  }
 0x36b   :  { %s1276_s2 = smov [#allocation8]  }
 0x36c   :  { %s933_s0 = sshll.u32 %s1276_s2, 4  ;;  %s934_s0 = int_to_ptr.vmem [resolvable:$true] %s933_s0 }
 0x36d   :  { %s1240_s5 = scalar_lea.vmem %s934_s0, 16  ;;  %s1244_s17 = scalar_lea.vmem %s934_s0, 32 }
 0x36e   :  { %p1241_p6 = scmp.ne.s32.totalorder %s934_s0, %s1240_s5  ;;  %p1245_p7 = scmp.lt.s32.totalorder %s934_s0, %s934_s0 }
 0x36f   :  { %p1246_p8 = scmp.lt.s32.totalorder %s1244_s17, %s1240_s5 }
 0x371   :  { %p1247_p9 = por %p1246_p8, %p1245_p7 }
 0x373   :  { %p1248_p10 = pnand %p1247_p9, %p1241_p6 }
 0x3f1   :  { %v920_v10 = vpop.xlane.xlu1 %919 }
 0x3f2   :  { %1158 = vlog2.f32 %v920_v10 }
 0x3ff   :  { %v1159_v11 = vpop.eup %1158 }
 0x400   :  { %v922_v12 = vmul.f32 0.6931472, %v1159_v11 }
 0x402   :  { %v923_v13 = vsub.f32 %v915_v6, %v922_v12 }
 0x404   :  { %924 = vst.msk [vmem:[#allocation8] sm:$0x1] %vm911_vm3, %v923_v13 }
 0x405   :  { %1251 = shalt.err (!%p1248_p10)
}
 0x406   :  { %936 = dma.vmem_to_hbm [thread:$0]  %s934_s0, 16, %s1500_s10, [#allocation4]  }
 0x407   :  { %1264 = dma.done.wait [#allocation4], 16  }
 0x408   :  { %1265 = vsyncadd [#allocation4], 4294967280 }
 0x409   :  { %1266 = dma.done.wait [#allocation10], 16  }
 0x40a   :  { %1267 = vsyncadd [#allocation10], 4294967280 }
 0x40b   :  { %953 = vsyncpa [#allocation3], 1 }
 0x40c   :  { %954 = vsyncpa [#allocation6], 1 }
 0x40d   :  { %955 = vsyncpa [#allocation4], 1 }
 0x40e   :  { %956 = vsyncpa [#allocation10], 1 }

</bundles_post_ra>
